<compile_context>
chip_gen: v5e
topology: v5e:2x2
jax: 0.10.0
libtpu: 0.0.40
codegen_flags: <defaults>
</compile_context>

<pallas_src>
import jax
import jax.numpy as jnp
from jax.experimental import pallas as pl
from jax.experimental.pallas import tpu as pltpu


# Conservative per-step VMEM budget: safe on v7x (64 MiB physical, 32 MiB scoped
# default) and therefore on v5e/v6e (128 MiB physical) as well.
_DEFAULT_VMEM_BUDGET = 34 * 1024 * 1024
_VMEM_LIMIT_CAP = 48 * 1024 * 1024


def _round_up(x, m):
    return (x + m - 1) // m * m


def _pick_m_tile(total, max_tile, align=8):
    """total is a multiple of `align`. Pick an M tile (multiple of `align`,
    <= max_tile) keeping padded-row waste small (<= ~6%), preferring big tiles."""
    if total <= max_tile:
        return total
    max_tile = max(align, max_tile - max_tile % align)
    slack = max(align, total // 16)
    for t in range(max_tile, align - 1, -align):
        if _round_up(total, t) - total <= slack:
            return t
    return align


def _pick_n_tile(total, max_tile, align=128):
    """total is a multiple of `align`. Pick an N tile that divides `total`
    exactly (lane-dense, no wasted columns); fall back to `align` (=128)."""
    if total <= max_tile:
        return total
    max_tile = max(align, max_tile - max_tile % align)
    for t in range(max_tile, align - 1, -align):
        if total % t == 0:
            return t
    return align


def _vmem_bytes(tm, tn, k, mm_bytes, out_bytes, with_scratch):
    """Rough per-step VMEM estimate (double-buffered BlockSpec inputs/outputs)."""
    x_b = 2 * tm * k * 4                   # x tile, f32
    w_b = 2 * k * tn * mm_bytes            # W^T tile (conservatively 2 buffers)
    b_b = 2 * 8 * tn * 4                   # bias tile (sublane-padded)
    o_b = 2 * tm * tn * out_bytes          # output tile
    s_b = tm * k * mm_bytes if with_scratch else 0   # cached log(x)
    return x_b + w_b + b_b + o_b + s_b


# ----------------------------- kernels -------------------------------------


def _pu_kernel_resident(x_ref, w_ref, b_ref, o_ref):
    """Single N tile: W^T / bias resident for the whole call. Grid = (M_tiles,)."""
    lx = jnp.log(jnp.maximum(x_ref[...], jnp.float32(1e-6)))
    acc = jax.lax.dot_general(
        lx.astype(w_ref.dtype), w_ref[...],
        dimension_numbers=(((1,), (0,)), ((), ())),
        preferred_element_type=jnp.float32,
    )
    o_ref[...] = jnp.exp(acc + b_ref[...]).astype(o_ref.dtype)


def _pu_kernel_tiled(x_ref, w_ref, b_ref, o_ref, logx_ref):
    """Grid = (M_tiles, N_tiles): log(clamp(x)) computed once per M tile and
    cached in VMEM scratch.  Requires N to be the inner, in-order ("arbitrary")
    grid axis and x's index_map to be constant in j."""
    @pl.when(pl.program_id(1) == 0)
    def _():
        lx = jnp.log(jnp.maximum(x_ref[...], jnp.float32(1e-6)))
        logx_ref[...] = lx.astype(logx_ref.dtype)

    acc = jax.lax.dot_general(
        logx_ref[...], w_ref[...],
        dimension_numbers=(((1,), (0,)), ((), ())),
        preferred_element_type=jnp.float32,
    )
    o_ref[...] = jnp.exp(acc + b_ref[...]).astype(o_ref.dtype)


# ----------------------------- wrappers ------------------------------------


def pack_product_unit_params(weights, biases, *, use_bf16_matmul=True):
    """One-time parameter packing (hoist out of the per-forward path):
    W -> W^T in MXU-native (K, N) layout, N padded to a multiple of 128."""
    out_dim, in_dim = weights.shape
    assert biases.shape == (out_dim,)
    mm_dtype = jnp.bfloat16 if use_bf16_matmul else jnp.float32

    n_pad = _round_up(out_dim, 128)
    w_t = weights.T.astype(mm_dtype)                       # (In, Out)
    b2d = biases.reshape(1, out_dim).astype(jnp.float32)   # (1, Out)
    if n_pad != out_dim:
        # zero-padded columns -> exp(0 + 0) = 1 in padded outputs; sliced off.
        w_t = jnp.concatenate(
            [w_t, jnp.zeros((in_dim, n_pad - out_dim), mm_dtype)], axis=1)
        b2d = jnp.concatenate(
            [b2d, jnp.zeros((1, n_pad - out_dim), jnp.float32)], axis=1)
    return w_t, b2d, out_dim


def product_unit_apply(x, w_t, b2d, out_dim, *, tm=512, tn=512,
                       out_dtype=jnp.float32,
                       vmem_budget=_DEFAULT_VMEM_BUDGET):
    """x: (B, In) f32; w_t: (In, n_pad) pre-packed; b2d: (1, n_pad) f32."""
    B, In = x.shape
    In_w, n_pad = w_t.shape
    assert In_w == In, "weight/input dim mismatch"
    assert n_pad % 128 == 0 and b2d.shape == (1, n_pad)

    mm_dtype = w_t.dtype
    mm_bytes = jnp.dtype(mm_dtype).itemsize
    out_bytes = jnp.dtype(out_dtype).itemsize

    # ---- M tiling: pad to a multiple of 8 first, then pick a big tile ------
    m_pad_min = _round_up(B, 8)
    tm_eff = _pick_m_tile(m_pad_min, tm)

    # ---- resident-weight fast path vs. tiled-N path ------------------------
    resident = _vmem_bytes(tm_eff, n_pad, In, mm_bytes, out_bytes,
                           with_scratch=False) <= vmem_budget
    if resident:
        tn_eff = n_pad
    else:
        tn_eff = _pick_n_tile(n_pad, tn)
        # Shrink tiles until the (scratch-carrying) tiled kernel fits VMEM.
        while (_vmem_bytes(tm_eff, tn_eff, In, mm_bytes, out_bytes, True)
               > vmem_budget and (tm_eff > 8 or tn_eff > 128)):
            if tm_eff >= tn_eff and tm_eff > 8:
                tm_eff = max(8, _round_up(tm_eff // 2, 8))
            elif tn_eff > 128:
                tn_eff = max(128, _round_up(tn_eff // 2, 128))
            else:
                break

    m_pad = _round_up(m_pad_min, tm_eff)

    vmem_est = _vmem_bytes(tm_eff, tn_eff, In, mm_bytes, out_bytes,
                           not resident)
    vmem_limit = min(_VMEM_LIMIT_CAP,
                     max(32 * 1024 * 1024, int(vmem_est * 1.25)))

    # ---- pad x rows (with 1.0 -> log(1)=0 -> finite padded outputs) --------
    x_p = x.astype(jnp.float32)
    if m_pad != B:
        x_p = jnp.concatenate(
            [x_p, jnp.ones((m_pad - B, In), jnp.float32)], axis=0)

    if resident:
        grid = (m_pad // tm_eff,)
        out_p = pl.pallas_call(
            _pu_kernel_resident,
            out_shape=jax.ShapeDtypeStruct((m_pad, n_pad), out_dtype),
            grid_spec=pltpu.PrefetchScalarGridSpec(
                num_scalar_prefetch=0,
                grid=grid,
                in_specs=[
                    pl.BlockSpec((tm_eff, In), lambda i: (i, 0)),
                    # constant block index -> W^T / bias DMA'd once per call
                    pl.BlockSpec((In, n_pad), lambda i: (0, 0)),
                    pl.BlockSpec((1, n_pad), lambda i: (0, 0)),
                ],
                out_specs=pl.BlockSpec((tm_eff, n_pad), lambda i: (i, 0)),
            ),
            compiler_params=pltpu.CompilerParams(
                # M rows are independent -> shards across v7x's 2 TensorCores.
                dimension_semantics=("parallel",),
                vmem_limit_bytes=vmem_limit,
            ),
        )(x_p, w_t, b2d)
    else:
        grid = (m_pad // tm_eff, n_pad // tn_eff)
        out_p = pl.pallas_call(
            _pu_kernel_tiled,
            out_shape=jax.ShapeDtypeStruct((m_pad, n_pad), out_dtype),
            grid_spec=pltpu.PrefetchScalarGridSpec(
                num_scalar_prefetch=0,
                grid=grid,
                in_specs=[
                    # x block constant across j -> DMA'd once per M tile.
                    pl.BlockSpec((tm_eff, In), lambda i, j: (i, 0)),
                    pl.BlockSpec((In, tn_eff), lambda i, j: (0, j)),
                    pl.BlockSpec((1, tn_eff), lambda i, j: (0, j)),
                ],
                out_specs=pl.BlockSpec((tm_eff, tn_eff), lambda i, j: (i, j)),
                scratch_shapes=[pltpu.VMEM((tm_eff, In), mm_dtype)],
            ),
            compiler_params=pltpu.CompilerParams(
                # N must stay the inner, in-order axis: the log(x) scratch is
                # filled at j == 0 for every M tile.
                dimension_semantics=("parallel", "arbitrary"),
                vmem_limit_bytes=vmem_limit,
            ),
        )(x_p, w_t, b2d)

    return out_p[:B, :out_dim]


def product_unit_layer(x, weights, biases, *, use_bf16_matmul=True, **kwargs):
    """Convenience wrapper: pack parameters and apply.  For inference with
    static weights, call pack_product_unit_params() once and reuse."""
    w_t, b2d, out_dim = pack_product_unit_params(
        weights, biases, use_bf16_matmul=use_bf16_matmul)
    return product_unit_apply(x, w_t, b2d, out_dim, **kwargs)


# ------------------------------- demo --------------------------------------


if __name__ == "__main__":
    key = jax.random.PRNGKey(0)

    # --- small shapes consistent with the module ---------------------------
    batch, input_dim, output_dim = 8, 32, 16
    kx, kw, kb = jax.random.split(key, 3)
    # positive inputs; clamp floor still exercised for any tiny values.
    x = jnp.abs(jax.random.normal(kx, (batch, input_dim), jnp.float32)) * 0.5 + 0.1
    weights = jax.random.normal(kw, (output_dim, input_dim), jnp.float32) * 0.2
    biases = jax.random.normal(kb, (output_dim,), jnp.float32) * 0.1

    ref = jnp.exp(jnp.log(jnp.maximum(x, 1e-6)) @ weights.T + biases)

    # exact-semantics f32 path
    out_f32 = jax.block_until_ready(
        product_unit_layer(x, weights, biases, use_bf16_matmul=False))
    assert out_f32.shape == (batch, output_dim)
    assert jnp.allclose(out_f32, ref, rtol=1e-4, atol=1e-5), "f32 mismatch"

    # default path: bf16 MXU operands, f32 accumulate / clamp / log / exp
    out_def = jax.block_until_ready(product_unit_layer(x, weights, biases))
    assert jnp.allclose(out_def, ref, rtol=5e-2, atol=1e-3), "bf16 mismatch"

    # --- larger case: non-multiple B, Out multiple of 128 but not of 256 ---
    B2, In2, Out2 = 300, 256, 384
    k1, k2, k3 = jax.random.split(jax.random.PRNGKey(0), 3)
    x2 = jnp.abs(jax.random.normal(k1, (B2, In2), jnp.float32)) * 0.5 + 0.1
    w2 = jax.random.normal(k2, (Out2, In2), jnp.float32) * 0.05
    b2 = jax.random.normal(k3, (Out2,), jnp.float32) * 0.1
    ref2 = jnp.exp(jnp.log(jnp.maximum(x2, 1e-6)) @ w2.T + b2)

    # resident-weight path, f32, pre-packed params (hoisted packing)
    w_t32, b2d32, od = pack_product_unit_params(w2, b2, use_bf16_matmul=False)
    out2_f32 = jax.block_until_ready(product_unit_apply(x2, w_t32, b2d32, od))
    assert out2_f32.shape == (B2, Out2)
    assert jnp.allclose(out2_f32, ref2, rtol=1e-3, atol=1e-4), "resident f32 mismatch"

    # default bf16 path (resident weights)
    out2_bf16 = jax.block_until_ready(product_unit_layer(x2, w2, b2))
    assert jnp.allclose(out2_bf16, ref2, rtol=1e-1, atol=1e-3), "resident bf16 mismatch"

    # force the tiled-N (scratch) kernel with a tiny VMEM budget to exercise it
    out2_tiled = jax.block_until_ready(
        product_unit_layer(x2, w2, b2, tn=128, vmem_budget=1 << 20))
    assert jnp.allclose(out2_tiled, ref2, rtol=1e-1, atol=1e-3), "tiled bf16 mismatch"

    print("KERNEL_OK")
</pallas_src>

<mosaic_0001>
module attributes {stable_mosaic.version = 11 : i64} {
  func.func @_pu_kernel_resident(%arg0: i32, %arg1: memref<8x32xf32, #tpu.memory_space<vmem>>, %arg2: memref<32x128xf32, #tpu.memory_space<vmem>>, %arg3: memref<1x128xf32, #tpu.memory_space<vmem>>, %arg4: memref<8x128xf32, #tpu.memory_space<vmem>>) attributes {dimension_semantics = [#tpu.dimension_semantics<parallel>], iteration_bounds = array<i64: 1>, scalar_prefetch = 0 : i64, scratch_operands = 0 : i64, tpu.core_type = #tpu.core_type<tc>, window_params = [{transform_indices = @transform_0, window_bounds = array<i64: 8, 32>}, {pipeline_mode = #tpu.pipeline_mode<synchronous>, transform_indices = @transform_1, window_bounds = array<i64: 32, 128>}, {pipeline_mode = #tpu.pipeline_mode<synchronous>, transform_indices = @transform_2, window_bounds = array<i64: 1, 128>}, {transform_indices = @transform_3, window_bounds = array<i64: 8, 128>}]} {
    %c0 = arith.constant 0 : index
    %c0_0 = arith.constant 0 : index
    %0 = vector.load %arg1[%c0, %c0_0] : memref<8x32xf32, #tpu.memory_space<vmem>>, vector<8x32xf32>
    %cst = arith.constant 9.99999997E-7 : f32
    %1 = vector.broadcast %cst : f32 to vector<8x32xf32>
    %2 = arith.maximumf %0, %1 : vector<8x32xf32>
    %3 = math.log %2 : vector<8x32xf32>
    %c0_1 = arith.constant 0 : index
    %c0_2 = arith.constant 0 : index
    %4 = vector.load %arg2[%c0_1, %c0_2] : memref<32x128xf32, #tpu.memory_space<vmem>>, vector<32x128xf32>
    %cst_3 = arith.constant dense<0.000000e+00> : vector<8x128xf32>
    %5 = tpu.matmul %3, %4, %cst_3 {dimension_numbers = #tpu.dot_dimension_numbers<[1], [0], [0], [1], [0, 0, 1, 1], [], []>} : vector<8x32xf32>, vector<32x128xf32>, vector<8x128xf32> -> vector<8x128xf32>
    %c0_4 = arith.constant 0 : index
    %c0_5 = arith.constant 0 : index
    %6 = vector.load %arg3[%c0_4, %c0_5] : memref<1x128xf32, #tpu.memory_space<vmem>>, vector<1x128xf32>
    %7 = vector.broadcast %6 : vector<1x128xf32> to vector<8x128xf32>
    %8 = arith.addf %5, %7 : vector<8x128xf32>
    %9 = math.exp %8 : vector<8x128xf32>
    %c0_6 = arith.constant 0 : index
    %c0_7 = arith.constant 0 : index
    %10 = vector.load %arg4[%c0_6, %c0_7] : memref<8x128xf32, #tpu.memory_space<vmem>>, vector<8x128xf32>
    tpu.vector_store %arg4[%c0_6, %c0_7], %9 {strides = array<i32>} : memref<8x128xf32, #tpu.memory_space<vmem>>, vector<8x128xf32>,
    return
  }
  func.func @transform_0(%arg0: i32) -> (i32, i32) {
    %c0_i32 = arith.constant 0 : i32
    %c0_i32_0 = arith.constant 0 : i32
    return %arg0, %c0_i32 : i32, i32
  }
  func.func @transform_1(%arg0: i32) -> (i32, i32) {
    %c0_i32 = arith.constant 0 : i32
    %c0_i32_0 = arith.constant 0 : i32
    %c0_i32_1 = arith.constant 0 : i32
    return %c0_i32, %c0_i32_0 : i32, i32
  }
  func.func @transform_2(%arg0: i32) -> (i32, i32) {
    %c0_i32 = arith.constant 0 : i32
    %c0_i32_0 = arith.constant 0 : i32
    %c0_i32_1 = arith.constant 0 : i32
    return %c0_i32, %c0_i32_0 : i32, i32
  }
  func.func @transform_3(%arg0: i32) -> (i32, i32) {
    %c0_i32 = arith.constant 0 : i32
    %c0_i32_0 = arith.constant 0 : i32
    return %arg0, %c0_i32 : i32, i32
  }
}

</mosaic_0001>

<bundles_post_ra>
// kernel: tpu_custom_call.1
= control target key start
LH: loop header
LB: loop body
LE: loop exit
PB: predicated region body
PF: predicated region fallthrough
CT: control target
= control target key end

     0   :  { %8 = vsyncpa [#allocation3], 0  ;;  %s228_s0 = inlined_call_operand.hbm [shape: f32[8,32], index: 0, kind: input, shape index: {}]   ;;  %s229_s1 = inlined_call_operand.hbm [shape: f32[32,128], index: 1, kind: input, shape index: {}]   ;;  %s230_s2 = inlined_call_operand.vmem [shape: f32[1,128], index: 2, kind: input, shape index: {}]   ;;  %s231_s3 = inlined_call_operand.hbm [shape: f32[8,128], index: 3, kind: output, shape index: {}]  }
   0x1   :  { %9 = vsyncpa [#allocation6], 0 }
   0x2   :  { %10 = vsyncpa [#allocation4], 0  ;;  %s16_s14 = sshll.u32 %s228_s0, 4  ;;  %s191_s15 = smov [#allocation2]   ;;  %s17_s14 = int_to_ptr.hbm [resolvable:$true] %s16_s14 }
   0x3   :  { %s18_s16 = sshll.u32 %s191_s15, 4  ;;  %s26_s19 = sshll.u32 %s229_s1, 4  ;;  %s19_s16 = int_to_ptr.vmem [resolvable:$true] %s18_s16  ;;  %s27_s19 = int_to_ptr.hbm [resolvable:$true] %s26_s19 }
   0x4   :  { %21 = dma.hbm_to_vmem [thread:$0]  %s17_s14, 128, %s19_s16, [#allocation3]  }
   0x5   :  { %s192_s20 = smov [#allocation5]   ;;  %s193_s22 = smov 128  }
   0x6   :  { %s28_s21 = sshll.u32 %s192_s20, 4  ;;  %s194_s23 = smov 8   ;;  %s29_s21 = int_to_ptr.vmem [resolvable:$true] %s28_s21 }
   0x7   :  { %34 = dma.hbm_to_vmem [thread:$0]  %s27_s19, 512, %s29_s21, [#allocation6], %s193_s22, %s193_s22, %s194_s23  }
   0x8   :  { %185 = dma.done.wait [#allocation3], 128  }
   0x9   :  { %186 = vsyncadd [#allocation3], 4294967168 }
   0xa   :  { %187 = dma.done.wait [#allocation6], 512  }
   0xb   :  { %188 = vsyncadd [#allocation6], 4294966784  ;;  %v52_v0 = vld [vmem:[#allocation5 + $0x18] sm:$0xff]  ;;  %v51_v1 = vld [vmem:[#allocation5 + $0x10] sm:$0xff]  ;;  %vm57_vm0 = vcmask 261120   ;;  %s195_s24 = smov [#allocation7]  }
   0xc   :  { %73 = vmatpush.msra.mxu0 %v52_v0  ;;  %v45_v2 = vld [vmem:[#allocation2] sm:$0xff]  ;;  %v50_v3 = vld [vmem:[#allocation5 + $0x8] sm:$0xff]  ;;  %v49_v5 = vld [vmem:[#allocation5] sm:$0xff]  ;;  %s89_s25 = sshll.u32 %s195_s24, 4  ;;  %s91_s28 = sshll.u32 %s231_s3, 4  ;;  %s90_s25 = int_to_ptr.vmem [resolvable:$true] %s89_s25  ;;  %s92_s28 = int_to_ptr.hbm [resolvable:$true] %s91_s28 }
   0xd   :  { %v46_v4 = vmax.f32 %v45_v2, 1e-06  ;;  %v108_v8 = vld [vmem:[%s230_s2] ss:$0 sm:$0xff] }
   0xe   :  { %74 = vmatpush.msra.mxu0 %v51_v1 }
   0xf   :  { %109 = vlog2.f32 %v46_v4 }
  0x10   :  { %75 = vmatpush.msra.mxu0 %v50_v3 }
  0x12   :  { %76 = vmatpush.msra.mxu0 %v49_v5 }
  0x15   :  { %v110_v6 = vpop.eup %109 }
  0x16   :  { %v48_v7 = vmul.f32 0.6931472, %v110_v6 }
  0x18   :  { %102 = vmatmul.msk.f32.vlgmr.msra.gmra.mxu0 %vm57_vm0, %v48_v7 }
  0x95   :  { %v78_v9 = vpop.f32.mrf.mxu0 }
  0x96   :  { %v79_v10 = vadd.f32 %v108_v8, %v78_v9 }
  0x98   :  { %v81_v11 = vmul.f32 1.442695, %v79_v10 }
  0x9a   :  { %111 = vpow2.f32 %v81_v11 }
  0xa0   :  { %v112_v12 = vpop.eup %111 }
  0xa1   :  { %83 = vst [vmem:[#allocation7] sm:$0xff] %v112_v12 }
  0xa2   :  { %94 = dma.vmem_to_hbm [thread:$0]  %s90_s25, 128, %s92_s28, [#allocation4]  }
  0xa3   :  { %189 = dma.done.wait [#allocation4], 128  }
  0xa4   :  { %190 = vsyncadd [#allocation4], 4294967168 }
  0xa5   :  { %99 = vsyncpa [#allocation3], 1 }
  0xa6   :  { %100 = vsyncpa [#allocation6], 1 }
  0xa7   :  { %101 = vsyncpa [#allocation4], 1 }

</bundles_post_ra>
